<compile_context>
chip_gen: v5e
topology: v5e:2x2
jax: 0.10.0
libtpu: 0.0.40
codegen_flags: <defaults>
</compile_context>

<pallas_src>
import functools

import jax
import jax.numpy as jnp
from jax import lax
from jax.experimental import pallas as pl
from jax.experimental.pallas import tpu as pltpu


_EPS = 1e-5                 # BatchNorm1d default eps
_MAX_LANE_TILE = 2048       # target lane tile; actual tile divides L_out

# Flips to False (and stays False) if stride-2 lane loads are not supported by
# the Mosaic lowering on this backend; we then fall back to an unfused pool.
_FUSED_POOL = {"ok": True}


def _pick_tile(L, target=_MAX_LANE_TILE):
    """Largest multiple-of-256 divisor of L that is <= target, else L itself."""
    if L <= target:
        return L
    t = (target // 256) * 256
    while t >= 256:
        if L % t == 0:
            return t
        t -= 256
    return L


def _compiler_params():
    return pltpu.CompilerParams(
        dimension_semantics=("parallel", "arbitrary"),
        vmem_limit_bytes=32 * 1024 * 1024,
    )


# ----------------------------------------------------------------------------
# Kernel A: im2col conv (single matmul) + bias + ELU + BN partial stats.
# ----------------------------------------------------------------------------
def _conv_elu_stats_kernel(xi_ref, w_ref, b_ref, y_ref, s1_ref, s2_ref):
    # xi_ref : (1, C_in*K, TL)  im2col slab tile (bf16 or f32)
    # w_ref  : (C_out, C_in*K)
    # b_ref  : (C_out, 1) f32
    # y_ref  : (1, C_out, TL) f32  conv+ELU activations
    # s1_ref : (1, C_out, 1) f32   per-batch-element sum   (acc over L tiles)
    # s2_ref : (1, C_out, 1) f32   per-batch-element sum^2 (acc over L tiles)
    lt = pl.program_id(1)

    acc = jnp.dot(w_ref[...], xi_ref[0],
                  preferred_element_type=jnp.float32)          # (C_out, TL)
    acc = acc + b_ref[...]                                     # conv bias
    # ELU(alpha=1)
    y = jnp.where(acc > 0, acc, jnp.exp(jnp.minimum(acc, 0.0)) - 1.0)
    y_ref[0] = y.astype(y_ref.dtype)

    ssum = jnp.sum(y, axis=1, keepdims=True)                   # (C_out, 1)
    ssq = jnp.sum(y * y, axis=1, keepdims=True)                # (C_out, 1)

    @pl.when(lt == 0)
    def _():
        s1_ref[0] = ssum
        s2_ref[0] = ssq

    @pl.when(lt != 0)
    def _():
        s1_ref[0] = s1_ref[0] + ssum
        s2_ref[0] = s2_ref[0] + ssq


def _conv_elu_stats(xi, w2d, b2, N, C_out, L_out, TL):
    CK = xi.shape[1]
    nlt = L_out // TL
    return pl.pallas_call(
        _conv_elu_stats_kernel,
        grid=(N, nlt),
        out_shape=(jax.ShapeDtypeStruct((N, C_out, L_out), jnp.float32),
                   jax.ShapeDtypeStruct((N, C_out, 1), jnp.float32),
                   jax.ShapeDtypeStruct((N, C_out, 1), jnp.float32)),
        in_specs=[
            pl.BlockSpec((1, CK, TL), lambda n, t: (n, 0, t)),
            pl.BlockSpec(w2d.shape, lambda n, t: (0, 0)),
            pl.BlockSpec(b2.shape, lambda n, t: (0, 0)),
        ],
        out_specs=(
            pl.BlockSpec((1, C_out, TL), lambda n, t: (n, 0, t)),
            pl.BlockSpec((1, C_out, 1), lambda n, t: (n, 0, 0)),
            pl.BlockSpec((1, C_out, 1), lambda n, t: (n, 0, 0)),
        ),
        compiler_params=_compiler_params(),
    )(xi, w2d, b2)


# ----------------------------------------------------------------------------
# Kernel B: BatchNorm normalize (batch stats) [+ fused MaxPool1d(2)].
# ----------------------------------------------------------------------------
def _bn_affine(s1_ref, s2_ref, g_ref, be_ref, count):
    inv_cnt = 1.0 / count
    mean = jnp.sum(s1_ref[...], axis=0) * inv_cnt              # (C_out, 1)
    ex2 = jnp.sum(s2_ref[...], axis=0) * inv_cnt
    var = jnp.maximum(ex2 - mean * mean, 0.0)                  # biased var
    inv = lax.rsqrt(var + _EPS)
    scale = g_ref[...] * inv                                   # gamma / std
    shift = be_ref[...] - mean * scale                         # beta - mean*..
    return scale, shift


def _bn_kernel(y_ref, s1_ref, s2_ref, g_ref, be_ref, z_ref, *, count):
    scale, shift = _bn_affine(s1_ref, s2_ref, g_ref, be_ref, count)
    z_ref[0] = (y_ref[0] * scale + shift).astype(z_ref.dtype)


def _bn_pool_kernel(y_ref, s1_ref, s2_ref, g_ref, be_ref, z_ref, p_ref, *,
                    count):
    # max() commutes with the positive-scale affine BN transform, so the
    # pair-max is taken on y (stride-2 lane loads) and normalized once.
    scale, shift = _bn_affine(s1_ref, s2_ref, g_ref, be_ref, count)
    z_ref[0] = (y_ref[0] * scale + shift).astype(z_ref.dtype)
    tlo = p_ref.shape[-1]
    y_even = y_ref[0, :, pl.ds(0, tlo, stride=2)]
    y_odd = y_ref[0, :, pl.ds(1, tlo, stride=2)]
    p_ref[0] = (jnp.maximum(y_even, y_odd) * scale + shift).astype(p_ref.dtype)


def _bn_normalize(y, s1, s2, g2, be2, TL, out_dtype, *, pool):
    N, C_out, L_out = y.shape
    nlt = L_out // TL
    count = float(N * L_out)
    in_specs = [
        pl.BlockSpec((1, C_out, TL), lambda n, t: (n, 0, t)),
        pl.BlockSpec(s1.shape, lambda n, t: (0, 0, 0)),
        pl.BlockSpec(s2.shape, lambda n, t: (0, 0, 0)),
        pl.BlockSpec(g2.shape, lambda n, t: (0, 0)),
        pl.BlockSpec(be2.shape, lambda n, t: (0, 0)),
    ]
    z_spec = pl.BlockSpec((1, C_out, TL), lambda n, t: (n, 0, t))
    if pool:
        Lo = L_out // 2
        return pl.pallas_call(
            functools.partial(_bn_pool_kernel, count=count),
            grid=(N, nlt),
            out_shape=(jax.ShapeDtypeStruct((N, C_out, L_out), out_dtype),
                       jax.ShapeDtypeStruct((N, C_out, Lo), out_dtype)),
            in_specs=in_specs,
            out_specs=(z_spec,
                       pl.BlockSpec((1, C_out, TL // 2),
                                    lambda n, t: (n, 0, t))),
            compiler_params=_compiler_params(),
        )(y, s1, s2, g2, be2)
    return pl.pallas_call(
        functools.partial(_bn_kernel, count=count),
        grid=(N, nlt),
        out_shape=jax.ShapeDtypeStruct((N, C_out, L_out), out_dtype),
        in_specs=in_specs,
        out_specs=z_spec,
        compiler_params=_compiler_params(),
    )(y, s1, s2, g2, be2)


# ----------------------------------------------------------------------------
# ConvBNELU (+ optional fused MaxPool) wrapper.
# ----------------------------------------------------------------------------
def conv_bn_elu(x, w, b, gamma=None, beta=None, *, dilation=1, ceil_pad=False,
                pool=False, use_bf16=True):
    """x: (N, C_in, L), w: (C_out, C_in, K), b/gamma/beta: (C_out,).

    Returns (z, pooled): z = ConvBNELU(x) [+ ceil pad], pooled = MaxPool1d(z)
    (pooled is None if pool=False).
    """
    N, C_in, L = x.shape
    C_out, _, K = w.shape
    if gamma is None:
        gamma = jnp.ones((C_out,), jnp.float32)
    if beta is None:
        beta = jnp.zeros((C_out,), jnp.float32)

    pad = (K + (K - 1) * (dilation - 1) - 1) // 2
    L_out = L + 2 * pad - dilation * (K - 1)
    xp = jnp.pad(x, ((0, 0), (0, 0), (pad, pad)))     # ConstantPad1d (glue)

    # im2col slab: stack the K shifted views along the contraction axis once.
    cols = [lax.slice_in_dim(xp, k * dilation, k * dilation + L_out, axis=2)
            for k in range(K)]
    xi = jnp.concatenate(cols, axis=1)                # (N, C_in*K, L_out)
    w2d = jnp.transpose(w, (0, 2, 1)).reshape(C_out, C_in * K)
    if use_bf16:
        xi = xi.astype(jnp.bfloat16)
        w2d = w2d.astype(jnp.bfloat16)
    b2 = b.reshape(C_out, 1).astype(jnp.float32)
    g2 = gamma.reshape(C_out, 1).astype(jnp.float32)
    be2 = beta.reshape(C_out, 1).astype(jnp.float32)

    TL = _pick_tile(L_out)
    y, s1, s2 = _conv_elu_stats(xi, w2d, b2, N, C_out, L_out, TL)

    out_dtype = x.dtype
    if pool and (L_out % 2 == 0) and _FUSED_POOL["ok"]:
        try:
            z, pooled = _bn_normalize(y, s1, s2, g2, be2, TL, out_dtype,
                                      pool=True)
            return z, pooled
        except Exception:
            # stride-2 lane loads not supported here -> unfused fallback.
            _FUSED_POOL["ok"] = False

    z = _bn_normalize(y, s1, s2, g2, be2, TL, out_dtype, pool=False)
    if ceil_pad and (L_out % 2 == 1):
        z = jnp.pad(z, ((0, 0), (0, 0), (0, 1)))      # ceil_padding (glue)
    pooled = None
    if pool:
        Nz, Cz, Lz = z.shape
        Lo = Lz // 2
        pooled = jnp.max(z[:, :, :2 * Lo].reshape(Nz, Cz, Lo, 2), axis=-1)
    return z, pooled


# ----------------------------------------------------------------------------
# Parameter init (matches nn.init.xavier_uniform_ / zeros_, BN gamma=1 beta=0).
# ----------------------------------------------------------------------------
def xavier_uniform(key, shape):
    c_out, c_in, k = shape
    bound = (6.0 / (c_in * k + c_out * k)) ** 0.5
    return jax.random.uniform(key, shape, jnp.float32, -bound, bound)


def init_encoder_params(key, filters, max_filters, in_channels, kernel_size):
    chans = [in_channels] + list(filters)
    keys = jax.random.split(key, len(filters) + 1)
    blocks = []
    for i in range(len(filters)):
        w = xavier_uniform(keys[i], (filters[i], chans[i], kernel_size))
        blocks.append((w,
                       jnp.zeros((filters[i],), jnp.float32),   # conv bias
                       jnp.ones((filters[i],), jnp.float32),    # BN gamma
                       jnp.zeros((filters[i],), jnp.float32)))  # BN beta
    w = xavier_uniform(keys[-1], (max_filters, filters[-1], kernel_size))
    bottom = (w, jnp.zeros((max_filters,), jnp.float32),
              jnp.ones((max_filters,), jnp.float32),
              jnp.zeros((max_filters,), jnp.float32))
    return blocks, bottom


# ----------------------------------------------------------------------------
# Encoder.forward
# ----------------------------------------------------------------------------
def encoder_forward(x, block_params, bottom_params, *, maxpool_kernel=2,
                    dilation=1, use_bf16=True):
    assert maxpool_kernel == 2, "Encoder uses MaxPool1d(2)"
    shortcuts = []
    for (w, b, g, be) in block_params:
        z, x = conv_bn_elu(x, w, b, g, be, dilation=dilation, ceil_pad=True,
                           pool=True, use_bf16=use_bf16)
        shortcuts.append(z)
    w, b, g, be = bottom_params
    encoded, _ = conv_bn_elu(x, w, b, g, be, dilation=dilation,
                             ceil_pad=False, pool=False, use_bf16=use_bf16)
    return encoded, shortcuts


# ----------------------------------------------------------------------------
# Pure-JAX reference (for a correctness check of the f32 path).
# ----------------------------------------------------------------------------
def _ref_conv_bn_elu(x, w, b, gamma, beta, *, dilation, ceil_pad):
    C_out = w.shape[0]
    K = w.shape[2]
    pad = (K + (K - 1) * (dilation - 1) - 1) // 2
    y = lax.conv_general_dilated(
        x, w, window_strides=(1,), padding=[(pad, pad)],
        rhs_dilation=(dilation,), dimension_numbers=("NCH", "OIH", "NCH"))
    y = y + b.reshape(1, C_out, 1)
    y = jnp.where(y > 0, y, jnp.exp(jnp.minimum(y, 0.0)) - 1.0)
    mean = jnp.mean(y, axis=(0, 2), keepdims=True)
    var = jnp.mean((y - mean) ** 2, axis=(0, 2), keepdims=True)
    z = (y - mean) * lax.rsqrt(var + _EPS)
    z = z * gamma.reshape(1, C_out, 1) + beta.reshape(1, C_out, 1)
    if ceil_pad and z.shape[2] % 2 == 1:
        z = jnp.pad(z, ((0, 0), (0, 0), (0, 1)))
    return z


def _ref_encoder(x, blocks, bottom, *, dilation=1):
    shortcuts = []
    for (w, b, g, be) in blocks:
        z = _ref_conv_bn_elu(x, w, b, g, be, dilation=dilation, ceil_pad=True)
        shortcuts.append(z)
        N, C, L = z.shape
        Lo = L // 2
        x = jnp.max(z[:, :, :2 * Lo].reshape(N, C, Lo, 2), axis=-1)
    w, b, g, be = bottom
    enc = _ref_conv_bn_elu(x, w, b, g, be, dilation=dilation, ceil_pad=False)
    return enc, shortcuts


if __name__ == "__main__":
    key = jax.random.PRNGKey(0)
    kx, kp = jax.random.split(key)

    filters = [4, 8]
    max_filters = 16
    in_channels = 2
    kernel_size = 9
    N, L = 2, 16

    x = jax.random.normal(kx, (N, in_channels, L), jnp.float32)
    block_params, bottom_params = init_encoder_params(
        kp, filters, max_filters, in_channels, kernel_size)

    # Correctness check of the f32 path against a pure-JAX reference.
    enc_ref, sc_ref = _ref_encoder(x, block_params, bottom_params)
    enc_f32, sc_f32 = encoder_forward(x, block_params, bottom_params,
                                      use_bf16=False)
    assert jnp.allclose(enc_f32, enc_ref, atol=2e-3, rtol=2e-3)
    for a, r in zip(sc_f32, sc_ref):
        assert jnp.allclose(a, r, atol=2e-3, rtol=2e-3)

    # Default (bf16-MXU) path.
    encoded, shortcuts = encoder_forward(x, block_params, bottom_params)
    jax.block_until_ready(encoded)
    for s in shortcuts:
        jax.block_until_ready(s)

    assert encoded.shape == (N, max_filters, L // (2 ** len(filters)))
    assert shortcuts[0].shape == (N, filters[0], L)
    assert shortcuts[1].shape == (N, filters[1], L // 2)
    print("KERNEL_OK")
</pallas_src>

<mosaic_0001>
module attributes {stable_mosaic.version = 11 : i64} {
  func.func @_conv_elu_stats_kernel(%arg0: i32, %arg1: i32, %arg2: memref<1x18x16xf32, #tpu.memory_space<vmem>>, %arg3: memref<4x18xf32, #tpu.memory_space<vmem>>, %arg4: memref<4x1xf32, #tpu.memory_space<vmem>>, %arg5: memref<1x4x16xf32, #tpu.memory_space<vmem>>, %arg6: memref<1x4x1xf32, #tpu.memory_space<vmem>>, %arg7: memref<1x4x1xf32, #tpu.memory_space<vmem>>) attributes {dimension_semantics = [#tpu.dimension_semantics<parallel>, #tpu.dimension_semantics<arbitrary>], iteration_bounds = array<i64: 2, 1>, scalar_prefetch = 0 : i64, scratch_operands = 0 : i64, tpu.core_type = #tpu.core_type<tc>, window_params = [{transform_indices = @transform_0, window_bounds = array<i64: 1, 18, 16>}, {pipeline_mode = #tpu.pipeline_mode<synchronous>, transform_indices = @transform_1, window_bounds = array<i64: 4, 18>}, {pipeline_mode = #tpu.pipeline_mode<synchronous>, transform_indices = @transform_2, window_bounds = array<i64: 4, 1>}, {transform_indices = @transform_3, window_bounds = array<i64: 1, 4, 16>}, {transform_indices = @transform_4, window_bounds = array<i64: 1, 4, 1>}, {transform_indices = @transform_5, window_bounds = array<i64: 1, 4, 1>}]} {
    %c0 = arith.constant 0 : index
    %c0_0 = arith.constant 0 : index
    %0 = vector.load %arg3[%c0, %c0_0] : memref<4x18xf32, #tpu.memory_space<vmem>>, vector<4x18xf32>
    %c0_1 = arith.constant 0 : index
    %c0_2 = arith.constant 0 : index
    %c0_3 = arith.constant 0 : index
    %1 = vector.load %arg2[%c0_1, %c0_2, %c0_3] : memref<1x18x16xf32, #tpu.memory_space<vmem>>, vector<1x18x16xf32>
    %2 = vector.shape_cast %1 : vector<1x18x16xf32> to vector<18x16xf32>
    %cst = arith.constant dense<0.000000e+00> : vector<4x16xf32>
    %3 = tpu.matmul %0, %2, %cst {dimension_numbers = #tpu.dot_dimension_numbers<[1], [0], [0], [1], [0, 0, 1, 1], [], []>} : vector<4x18xf32>, vector<18x16xf32>, vector<4x16xf32> -> vector<4x16xf32>
    %c0_4 = arith.constant 0 : index
    %c0_5 = arith.constant 0 : index
    %4 = vector.load %arg4[%c0_4, %c0_5] : memref<4x1xf32, #tpu.memory_space<vmem>>, vector<4x1xf32>
    %5 = vector.broadcast %4 : vector<4x1xf32> to vector<4x16xf32>
    %6 = arith.addf %3, %5 : vector<4x16xf32>
    %cst_6 = arith.constant 0.000000e+00 : f32
    %7 = vector.broadcast %cst_6 : f32 to vector<4x16xf32>
    %8 = arith.cmpf ogt, %6, %7 : vector<4x16xf32>
    %cst_7 = arith.constant 0.000000e+00 : f32
    %9 = vector.broadcast %cst_7 : f32 to vector<4x16xf32>
    %10 = arith.minimumf %6, %9 : vector<4x16xf32>
    %11 = math.exp %10 : vector<4x16xf32>
    %cst_8 = arith.constant 1.000000e+00 : f32
    %12 = vector.broadcast %cst_8 : f32 to vector<4x16xf32>
    %13 = arith.subf %11, %12 : vector<4x16xf32>
    %14 = arith.select %8, %6, %13 : vector<4x16xi1>, vector<4x16xf32>
    %c0_9 = arith.constant 0 : index
    %c0_10 = arith.constant 0 : index
    %c0_11 = arith.constant 0 : index
    %15 = vector.load %arg5[%c0_9, %c0_10, %c0_11] : memref<1x4x16xf32, #tpu.memory_space<vmem>>, vector<1x4x16xf32>
    %16 = vector.shape_cast %15 : vector<1x4x16xf32> to vector<4x16xf32>
    %17 = vector.shape_cast %14 : vector<4x16xf32> to vector<1x4x16xf32>
    tpu.vector_store %arg5[%c0_9, %c0_10, %c0_11], %17 {strides = array<i32>} : memref<1x4x16xf32, #tpu.memory_space<vmem>>, vector<1x4x16xf32>,
    %cst_12 = arith.constant dense<0.000000e+00> : vector<4xf32>
    %18 = vector.multi_reduction <add>, %14, %cst_12 [1] : vector<4x16xf32> to vector<4xf32>
    %19 = vector.shape_cast %18 : vector<4xf32> to vector<4x1xf32>
    %20 = arith.mulf %14, %14 : vector<4x16xf32>
    %cst_13 = arith.constant dense<0.000000e+00> : vector<4xf32>
    %21 = vector.multi_reduction <add>, %20, %cst_13 [1] : vector<4x16xf32> to vector<4xf32>
    %22 = vector.shape_cast %21 : vector<4xf32> to vector<4x1xf32>
    %c0_i32 = arith.constant 0 : i32
    %23 = arith.cmpi eq, %arg1, %c0_i32 : i32
    %24 = arith.extui %23 : i1 to i32
    %c0_i32_14 = arith.constant 0 : i32
    %25 = arith.cmpi ne, %24, %c0_i32_14 : i32
    scf.if %25 {
      %c0_17 = arith.constant 0 : index
      %c0_18 = arith.constant 0 : index
      %c0_19 = arith.constant 0 : index
      %29 = vector.load %arg6[%c0_17, %c0_18, %c0_19] : memref<1x4x1xf32, #tpu.memory_space<vmem>>, vector<1x4x1xf32>
      %30 = vector.shape_cast %29 : vector<1x4x1xf32> to vector<4x1xf32>
      %31 = vector.shape_cast %19 : vector<4x1xf32> to vector<1x4x1xf32>
      tpu.vector_store %arg6[%c0_17, %c0_18, %c0_19], %31 {strides = array<i32>} : memref<1x4x1xf32, #tpu.memory_space<vmem>>, vector<1x4x1xf32>,
      %c0_20 = arith.constant 0 : index
      %c0_21 = arith.constant 0 : index
      %c0_22 = arith.constant 0 : index
      %32 = vector.load %arg7[%c0_20, %c0_21, %c0_22] : memref<1x4x1xf32, #tpu.memory_space<vmem>>, vector<1x4x1xf32>
      %33 = vector.shape_cast %32 : vector<1x4x1xf32> to vector<4x1xf32>
      %34 = vector.shape_cast %22 : vector<4x1xf32> to vector<1x4x1xf32>
      tpu.vector_store %arg7[%c0_20, %c0_21, %c0_22], %34 {strides = array<i32>} : memref<1x4x1xf32, #tpu.memory_space<vmem>>, vector<1x4x1xf32>,
    } else {
    }
    %c0_i32_15 = arith.constant 0 : i32
    %26 = arith.cmpi ne, %arg1, %c0_i32_15 : i32
    %27 = arith.extui %26 : i1 to i32
    %c0_i32_16 = arith.constant 0 : i32
    %28 = arith.cmpi ne, %27, %c0_i32_16 : i32
    scf.if %28 {
      %c0_17 = arith.constant 0 : index
      %c0_18 = arith.constant 0 : index
      %c0_19 = arith.constant 0 : index
      %29 = vector.load %arg6[%c0_17, %c0_18, %c0_19] : memref<1x4x1xf32, #tpu.memory_space<vmem>>, vector<1x4x1xf32>
      %30 = vector.shape_cast %29 : vector<1x4x1xf32> to vector<4x1xf32>
      %31 = arith.addf %30, %19 : vector<4x1xf32>
      %c0_20 = arith.constant 0 : index
      %c0_21 = arith.constant 0 : index
      %c0_22 = arith.constant 0 : index
      %32 = vector.load %arg6[%c0_20, %c0_21, %c0_22] : memref<1x4x1xf32, #tpu.memory_space<vmem>>, vector<1x4x1xf32>
      %33 = vector.shape_cast %32 : vector<1x4x1xf32> to vector<4x1xf32>
      %34 = vector.shape_cast %31 : vector<4x1xf32> to vector<1x4x1xf32>
      tpu.vector_store %arg6[%c0_20, %c0_21, %c0_22], %34 {strides = array<i32>} : memref<1x4x1xf32, #tpu.memory_space<vmem>>, vector<1x4x1xf32>,
      %c0_23 = arith.constant 0 : index
      %c0_24 = arith.constant 0 : index
      %c0_25 = arith.constant 0 : index
      %35 = vector.load %arg7[%c0_23, %c0_24, %c0_25] : memref<1x4x1xf32, #tpu.memory_space<vmem>>, vector<1x4x1xf32>
      %36 = vector.shape_cast %35 : vector<1x4x1xf32> to vector<4x1xf32>
      %37 = arith.addf %36, %22 : vector<4x1xf32>
      %c0_26 = arith.constant 0 : index
      %c0_27 = arith.constant 0 : index
      %c0_28 = arith.constant 0 : index
      %38 = vector.load %arg7[%c0_26, %c0_27, %c0_28] : memref<1x4x1xf32, #tpu.memory_space<vmem>>, vector<1x4x1xf32>
      %39 = vector.shape_cast %38 : vector<1x4x1xf32> to vector<4x1xf32>
      %40 = vector.shape_cast %37 : vector<4x1xf32> to vector<1x4x1xf32>
      tpu.vector_store %arg7[%c0_26, %c0_27, %c0_28], %40 {strides = array<i32>} : memref<1x4x1xf32, #tpu.memory_space<vmem>>, vector<1x4x1xf32>,
    } else {
    }
    return
  }
  func.func @transform_0(%arg0: i32, %arg1: i32) -> (i32, i32, i32) {
    %c0_i32 = arith.constant 0 : i32
    %c0_i32_0 = arith.constant 0 : i32
    return %arg0, %c0_i32, %arg1 : i32, i32, i32
  }
  func.func @transform_1(%arg0: i32, %arg1: i32) -> (i32, i32) {
    %c0_i32 = arith.constant 0 : i32
    %c0_i32_0 = arith.constant 0 : i32
    %c0_i32_1 = arith.constant 0 : i32
    return %c0_i32, %c0_i32_0 : i32, i32
  }
  func.func @transform_2(%arg0: i32, %arg1: i32) -> (i32, i32) {
    %c0_i32 = arith.constant 0 : i32
    %c0_i32_0 = arith.constant 0 : i32
    %c0_i32_1 = arith.constant 0 : i32
    return %c0_i32, %c0_i32_0 : i32, i32
  }
  func.func @transform_3(%arg0: i32, %arg1: i32) -> (i32, i32, i32) {
    %c0_i32 = arith.constant 0 : i32
    %c0_i32_0 = arith.constant 0 : i32
    return %arg0, %c0_i32, %arg1 : i32, i32, i32
  }
  func.func @transform_4(%arg0: i32, %arg1: i32) -> (i32, i32, i32) {
    %c0_i32 = arith.constant 0 : i32
    %c0_i32_0 = arith.constant 0 : i32
    %c0_i32_1 = arith.constant 0 : i32
    return %arg0, %c0_i32, %c0_i32_0 : i32, i32, i32
  }
  func.func @transform_5(%arg0: i32, %arg1: i32) -> (i32, i32, i32) {
    %c0_i32 = arith.constant 0 : i32
    %c0_i32_0 = arith.constant 0 : i32
    %c0_i32_1 = arith.constant 0 : i32
    return %arg0, %c0_i32, %c0_i32_0 : i32, i32, i32
  }
}

</mosaic_0001>

<bundles_post_ra>
// kernel: tpu_custom_call.1
= control target key start
LH: loop header
LB: loop body
LE: loop exit
PB: predicated region body
PF: predicated region fallthrough
CT: control target
= control target key end

     0   :  { %11 = vsyncpa [#allocation3], 0  ;;  %s796_s0 = inlined_call_operand.vmem [shape: f32[2,18,16], index: 0, kind: input, shape index: {}]   ;;  %s797_s1 = inlined_call_operand.vmem [shape: f32[4,18], index: 1, kind: input, shape index: {}]   ;;  %s798_s2 = inlined_call_operand.vmem [shape: f32[4,1], index: 2, kind: input, shape index: {}]   ;;  %s799_s3 = inlined_call_operand.hbm [shape: f32[2,4,16], index: 3, kind: output, shape index: {0}]   ;;  %s800_s4 = inlined_call_operand.vmem [shape: f32[2,4,1], index: 4, kind: output, shape index: {1}]   ;;  %s801_s5 = inlined_call_operand.vmem [shape: f32[2,4,1], index: 5, kind: output, shape index: {2}]  }
   0x1   :  { %13 = vsyncpa [#allocation3 + $0x1], 0  ;;  %s680_s18 = smov 0   ;;  %s682_s19 = smov 0  }
   0x2   :  { %s684_s20 = smov 0   ;;  %s686_s21 = smov 0  }
   0x3   :  { %s688_s22 = smov 0   ;;  %s690_s23 = smov 0  }
   0x4 LB: > { %s493_s24 = sadd.s32 4294967295, %s647_s23   ;;  %s494_s25 = sadd.s32 4294967294, %s647_s23   ;;  %s647_s23 = sphi %s690_s23, %s19_s23   ;;  %s643_s22 = sphi %s688_s22, %s808_s22   ;;  %s639_s21 = sphi %s686_s21, %s807_s21   ;;  %s635_s20 = sphi %s684_s20, %s806_s20   ;;  %s631_s19 = sphi %s682_s19, %s805_s19   ;;  %s627_s18 = sphi %s680_s18, %s804_s18  }
   0x5   : > { %s31_s26 = sadd.s32 1, %s643_s22  ;;  %s110_s27 = sadd.s32 1, %s635_s20 }
   0x6   : > { %p33_p0 = scmp.ge.s32.totalorder %s31_s26, 2  ;;  %p120_p1 = scmp.ne.s32.totalorder %s635_s20, %s631_s19 }
   0x7   : > { %p121_p2 = scmp.eq.s32.totalorder %s493_s24, 1  ;;  %p126_p3 = scmp.ne.s32.totalorder %s631_s19, %s627_s18 }
   0x8   : > { %s810_s26 = smov (%p33_p0, %s31_s26), 0  ;;  %p127_p5 = scmp.eq.s32.totalorder %s494_s25, 1 }
   0x9   : > { %p720_p4 = por %p121_p2, %p120_p1  ;;  %s105_s29 = ssub.s32 %s643_s22, %s810_s26 }
   0xa   : > { %p497_p6 = scmp.ge.s32.totalorder %s647_s23, 1  ;;  %p108_p7 = scmp.eq.s32.totalorder %s105_s29, 0 }
   0xb   : > { %p727_p8 = por %p127_p5, %p126_p3  ;;  %p214_p9 = scmp.lt.s32.totalorder %s647_s23, 3 }
   0xc   : > { %s733_s6 = scalar_select %p108_p7, %s635_s20, %s110_s27  }
   0xd   : > { %p215_p10 = pnand %p497_p6, %p214_p9 }
   0xe   : > { %p253_p11 = scmp.lt.s32.totalorder (!%p215_p10), %s639_s21, 1  ;;  %s238_s16 = sand.u32 (!%p215_p10), 1, %s631_s19  }
   0xf   : > { %218 = sbr.rel (%p215_p10) target bundleno = 294 (0x126), region = 32  ;;  %s506_s17 = sshll.u32 (!%p215_p10), %s639_s21, 2 }
  0x10   : > { %s498_s24 = sshll.u32 (!%p215_p10), %s238_s16, 2  ;;  %s360_s29 = scalar_lea.hbm (!%p215_p10), %s799_s3, %s506_s17 }
  0x11   : > { %s240_s7 = scalar_lea.vmem (!%p215_p10), [#allocation2], %s498_s24  ;;  %s589_s15 = scalar_lea.hbm (!%p215_p10), %s799_s3, 8 }
  0x12   : > { %s362_s8 = sshll.u32 (!%p215_p10), %s240_s7, 4  ;;  %s363_s8 = int_to_ptr.vmem [resolvable:$true] %s362_s8 }
  0x14   : > { %v649_v0 = vmov 0   ;;  %v273_v1 = vld [vmem:[%s798_s2] sm:$0xf]  ;;  %s740_s9 = scalar_select %p253_p11, %s639_s21, 1  ;;  %vm283_vm0 = vcmask 1041408   ;;  %vm279_vm1 = vcmask 146432  }
  0x15   : > { %566 = vset.pattern.permute.xlu0 %v649_v0  ;;  %v269_v5 = vld [vmem:[%s797_s1] sm:$0xf]  ;;  %vm313_vm2 = vcmask 125952   ;;  %s341_s21 = scalar_lea.sflag [#allocation3], %s238_s16 }
  0x16   : > { %276 = vperm.xlu0 %566, %v273_v1   ;;  %s509_s10 = smul.u32 24, %s740_s9 }
  0x18   : > { %s260_s13 = scalar_lea.vmem %s796_s0, %s509_s10  ;;  %s364_s10 = sshll.u32 %s360_s29, 4  ;;  %s365_s10 = int_to_ptr.hbm [resolvable:$true] %s364_s10 }
  0x19   : > { %v272_v2 = vld [vmem:[%s260_s13 + $0x10] sm:$0x3]  ;;  %v271_v3 = vld [vmem:[%s260_s13 + $0x8] sm:$0xff]  ;;  %v270_v4 = vld [vmem:[%s260_s13] sm:$0xff]  ;;  %s583_s11 = sshra.s32 %s365_s10, 4  ;;  %s584_s11 = int_to_ptr.hbm [resolvable:$true] %s583_s11 }
  0x1a   : > { %502 = vmatpush.msk.msra.mxu0 %vm283_vm0, %v272_v2  ;;  %s585_s12 = scalar_lea.hbm %s584_s11, 4  ;;  %p590_p1 = scmp.lt.s32.totalorder %s584_s11, %s799_s3 }
  0x1b   : > { %p586_p12 = scmp.ne.s32.totalorder %s584_s11, %s585_s12  ;;  %p591_p2 = scmp.lt.s32.totalorder %s589_s15, %s585_s12 }
  0x1c   : > { %301 = vmatpush.msra.mxu0 %v271_v3 }
  0x1d   : > { %p587_p13 = pnand %p586_p12, %p720_p4  ;;  %p592_p3 = por %p591_p2, %p590_p1 }
  0x1e   : > { %302 = vmatpush.msra.mxu0 %v270_v4 }
  0x1f   : > { %503 = vmatmul.msk.f32.vlgmr.msra.gmra.mxu0 %vm279_vm1, %v269_v5  ;;  %p588_p0 = pneg %p587_p13 }
  0x21   : > { %p593_p5 = pnand %p592_p3, %p588_p0 }
  0x88   : > { %v277_v6 = vpop.permute.xlu0 %276 }
  0x9c   : > { %v304_v7 = vpop.f32.mrf.mxu0 }
  0x9d   : > { %v305_v8 = vadd.f32 %v304_v7, %v277_v6 }
  0x9f   : > { %v308_v9 = vmin.f32 %v305_v8, 0.0  ;;  %vm307_vm3 = vcmp.gt.f32.partialorder %v305_v8, 0.0 }
  0xa1   : > { %v309_v10 = vmul.f32 1.442695, %v308_v9 }
  0xa3   : > { %567 = vpow2.f32 %v309_v10 }
  0xa9   : > { %v568_v11 = vpop.eup %567 }
  0xaa   : > { %v504_v12 = vadd.f32 -1.0, %v568_v11 }
  0xac   : > { %v312_v13 = vsel %vm307_vm3, %v305_v8, %v504_v12 }
  0xad   : > { %v315_v14 = vsel %vm313_vm2, %v312_v13, 0.0  ;;  %v318_v15 = vmul.f32 %v312_v13, %v312_v13  ;;  %314 = vst.msk [vmem:[%s240_s7] sm:$0xf] %vm313_vm2, %v312_v13 }
  0xae   : > { %316 = vadd.xlane.f32.xlu0 %v315_v14 }
  0xaf   : > { %596 = shalt.err (!%p593_p5)
}
  0xb0   : > { %510 = dma.vmem_to_hbm [thread:$0]  (%p720_p4), %s363_s8, 64, %s365_s10, %s341_s21   ;;  %v319_v16 = vsel %vm313_vm2, %v318_v15, 0.0  ;;  %vm326_vm4 = vcmask 3072  }
  0xb1   : > { %320 = vadd.xlane.f32.xlu1 %v319_v16  ;;  %s500_s16 = sshll.u32 %s740_s9, 2 }
  0xb2   : > { %s264_s29 = scalar_lea.vmem %s800_s4, %s500_s16  ;;  %s268_s12 = scalar_lea.vmem %s801_s5, %s500_s16 }
 0x121   : > { %v317_v17 = vpop.xlane.xlu0 %316 }
 0x122   : > { %327 = vst.msk [vmem:[%s264_s29] sm:$0xf] %vm326_vm4, %v317_v17 }
 0x124   : > { %v321_v18 = vpop.xlane.xlu1 %320 }
 0x125   : > { %328 = vst.msk [vmem:[%s268_s12] sm:$0xf] %vm326_vm4, %v321_v18 }
 0x126 PF: > { %p516_p4 = scmp.ge.s32.totalorder %s647_s23, 2  ;;  %s382_s28 = sand.u32 1, %s627_s18  }
 0x127   : > { %s383_s9 = scalar_lea.sflag [#allocation3], %s382_s28 }
 0x128   : > { %p513_p6 = pnand %p516_p4, %p727_p8 }
 0x12a   : > { %p514_p7 = pneg %p513_p6 }
 0x12c   : > { %622 = dma.done.wait (%p514_p7), %s383_s9, 64  }
 0x12d   : > { %624 = vsyncadd (%p514_p7), %s383_s9, 4294967232  ;;  %s19_s23 = sadd.s32 1, %s647_s23   ;;  %s804_s18 = smov %s631_s19 }
 0x12e   : > { %p16_p9 = scmp.ge.s32.totalorder %s19_s23, 4   ;;  %s805_s19 = smov %s635_s20 }
 0x12f   : > { %s806_s20 = smov %s733_s6  ;;  %s807_s21 = smov %s643_s22 }
 0x130   : > { %s808_s22 = smov %s810_s26  ;;  %18 = sbr.rel (!%p16_p9) target bundleno = 4 (0x4), region = 99 }
 0x135   :  { %403 = vsyncpa [#allocation3], 1 }
 0x136   :  { %405 = vsyncpa [#allocation3 + $0x1], 1 }

</bundles_post_ra>
